<compile_context>
chip_gen: v7x
topology: tpu7x:2x2x1
jax: 0.10.0
libtpu: 0.0.40
codegen_flags: <defaults>
</compile_context>

<pallas_src>
import functools

import jax
import jax.numpy as jnp
from jax.experimental import pallas as pl
from jax.experimental.pallas import tpu as pltpu

_LANE = 128
_ACC_SUB = 8                      # sublanes of the per-core partial-sum slab
_TARGET_BLOCK_BYTES = 4 << 20     # ~4 MiB per input per pipeline buffer


def _make_sq_diff_sum_kernel(block_rows: int, rows: int,
                             blocks_per_split: int, need_mask: bool):
    """Kernel accumulating sum((s - t)^2) into an (8, 128) partial-sum slab."""
    vreg_acc = (block_rows % _ACC_SUB == 0)

    def kernel(s_ref, t_ref, psum_ref):
        i = pl.program_id(1)

        @pl.when(i == 0)
        def _init():
            psum_ref[...] = jnp.zeros_like(psum_ref)

        # Hot path: cast in-kernel (inputs stay native dtype in HBM), VPU math.
        d = s_ref[...].astype(jnp.float32) - t_ref[...].astype(jnp.float32)
        sq = d * d

        if need_mask:
            # Zero out rows past the end of the tensor (ragged last block and
            # any clamped duplicate block on the second core-split).  The
            # where() is pure VPU work and fully hidden under the HBM stream.
            blk = pl.program_id(0) * blocks_per_split + i
            row0 = blk * block_rows
            rid = jax.lax.broadcasted_iota(jnp.int32, sq.shape, 0) + row0
            sq = jnp.where(rid < rows, sq, 0.0)

        if vreg_acc:
            # Tile-aligned reshape + leading-axis reduce: pure VPU adds into
            # 1024 lane-parallel partial sums; no per-step XLU scalar reduce.
            psum_ref[...] += jnp.sum(sq.reshape(-1, _ACC_SUB, _LANE), axis=0)
        else:
            # Tiny single-block case whose row count is not a multiple of 8.
            psum_ref[0:1, :] += jnp.sum(sq, axis=0, keepdims=True)

    return kernel


@functools.partial(jax.jit, static_argnames=("lam",))
def vqvae_loss(sample, target, commit_loss, lam: float = 0.1):
    """Pallas equivalent of VQVAELoss.forward.

    Args:
      sample:      (B, C, H, W) reconstruction (output.sample)
      target:      (B, C, H, W) target image
      commit_loss: scalar commitment loss (output.commit_loss)
    Returns:
      dict with scalar 'loss', 'reconst', 'commit_loss' (float32).
    """
    assert sample.shape == target.shape
    total = 1
    for dsz in sample.shape:
        total *= dsz
    commit = jnp.asarray(commit_loss, jnp.float32).reshape(())

    rows = total // _LANE
    rem = total - rows * _LANE

    s2 = t2 = None
    if rem:
        # Rare path (total not a multiple of 128): sum the <128-element tail
        # in plain JAX.  The prefix slice below may copy; typical image
        # tensors never hit this branch.
        fs = sample.reshape(-1)
        ft = target.reshape(-1)
        dt = (fs[rows * _LANE:].astype(jnp.float32)
              - ft[rows * _LANE:].astype(jnp.float32))
        tail_sum = jnp.sum(dt * dt)
        if rows:
            s2 = fs[: rows * _LANE].reshape(rows, _LANE)
            t2 = ft[: rows * _LANE].reshape(rows, _LANE)
    else:
        tail_sum = jnp.float32(0.0)
        s2 = sample.reshape(rows, _LANE)
        t2 = target.reshape(rows, _LANE)

    if rows == 0:
        sq_sum = tail_sum
    else:
        # Dtype-adaptive streaming block: ~4 MiB per input per pipeline
        # buffer, rounded down to a multiple of 8 sublanes.
        itemsize = max(jnp.dtype(sample.dtype).itemsize,
                       jnp.dtype(target.dtype).itemsize)
        max_block_rows = max(
            _ACC_SUB,
            (_TARGET_BLOCK_BYTES // (_LANE * itemsize)) // _ACC_SUB * _ACC_SUB)
        block_rows = rows if rows <= max_block_rows else max_block_rows
        n_blocks = -(-rows // block_rows)
        # Split blocks across the 2 TensorCores (v7x) only when there is
        # enough work; on 1-TC chips the extra axis is a cheap sequential loop.
        n_splits = 2 if n_blocks >= 2 else 1
        bpc = -(-n_blocks // n_splits)          # blocks per core-split
        need_mask = (n_splits * bpc * block_rows > rows)

        kernel = _make_sq_diff_sum_kernel(block_rows, rows, bpc, need_mask)

        def in_map(c, i):
            # Clamp so duplicate iterations (odd block counts) stay in bounds;
            # their contribution is masked to zero inside the kernel.
            return (jnp.minimum(c * bpc + i, n_blocks - 1), 0)

        psums = pl.pallas_call(
            kernel,
            out_shape=jax.ShapeDtypeStruct((n_splits * _ACC_SUB, _LANE),
                                           jnp.float32),
            grid_spec=pltpu.PrefetchScalarGridSpec(
                num_scalar_prefetch=0,
                grid=(n_splits, bpc),
                in_specs=[
                    pl.BlockSpec((block_rows, _LANE), in_map),
                    pl.BlockSpec((block_rows, _LANE), in_map),
                ],
                out_specs=pl.BlockSpec((_ACC_SUB, _LANE), lambda c, i: (c, 0)),
            ),
            compiler_params=pltpu.CompilerParams(
                dimension_semantics=("parallel", "arbitrary"),
                vmem_limit_bytes=48 << 20,
            ),
        )(s2, t2)
        sq_sum = jnp.sum(psums) + tail_sum

    reconst = sq_sum / jnp.float32(total)
    loss = reconst + jnp.float32(lam) * commit
    return {"loss": loss, "reconst": reconst, "commit_loss": commit}


if __name__ == "__main__":
    key = jax.random.PRNGKey(0)
    k1, k2, k3 = jax.random.split(key, 3)

    B, C, H, W = 2, 4, 16, 16
    sample = jax.random.normal(k1, (B, C, H, W), dtype=jnp.float32)
    target = jax.random.normal(k2, (B, C, H, W), dtype=jnp.float32)
    commit_loss = jnp.abs(jax.random.normal(k3, (), dtype=jnp.float32))
    lam = 0.1

    out = vqvae_loss(sample, target, commit_loss, lam=lam)
    jax.block_until_ready(out)

    # Reference (pure JAX, mirrors the PyTorch forward).
    ref_reconst = jnp.mean((sample - target) ** 2)
    ref_loss = ref_reconst + lam * commit_loss

    assert jnp.allclose(out["reconst"], ref_reconst, rtol=1e-5, atol=1e-5)
    assert jnp.allclose(out["loss"], ref_loss, rtol=1e-5, atol=1e-5)
    assert jnp.allclose(out["commit_loss"], commit_loss, rtol=1e-6, atol=1e-6)

    print("KERNEL_OK")
</pallas_src>

<mosaic_0001>
module attributes {stable_mosaic.version = 11 : i64} {
  func.func @kernel(%arg0: i32, %arg1: i32, %arg2: memref<16x128xf32, #tpu.memory_space<vmem>>, %arg3: memref<16x128xf32, #tpu.memory_space<vmem>>, %arg4: memref<8x128xf32, #tpu.memory_space<vmem>>) attributes {dimension_semantics = [#tpu.dimension_semantics<parallel>, #tpu.dimension_semantics<arbitrary>], iteration_bounds = array<i64: 1, 1>, scalar_prefetch = 0 : i64, scratch_operands = 0 : i64, tpu.core_type = #tpu.core_type<tc>, window_params = [{transform_indices = @transform_0, window_bounds = array<i64: 16, 128>}, {transform_indices = @transform_1, window_bounds = array<i64: 16, 128>}, {transform_indices = @transform_2, window_bounds = array<i64: 8, 128>}]} {
    %c0_i32 = arith.constant 0 : i32
    %0 = arith.cmpi eq, %arg1, %c0_i32 : i32
    %1 = arith.extui %0 : i1 to i32
    %c0_i32_0 = arith.constant 0 : i32
    %2 = arith.cmpi ne, %1, %c0_i32_0 : i32
    scf.if %2 {
      %cst_8 = arith.constant 0.000000e+00 : f32
      %12 = vector.broadcast %cst_8 : f32 to vector<8x128xf32>
      %c0_9 = arith.constant 0 : index
      %c0_10 = arith.constant 0 : index
      %13 = vector.load %arg4[%c0_9, %c0_10] : memref<8x128xf32, #tpu.memory_space<vmem>>, vector<8x128xf32>
      tpu.vector_store %arg4[%c0_9, %c0_10], %12 {strides = array<i32>} : memref<8x128xf32, #tpu.memory_space<vmem>>, vector<8x128xf32>,
    } else {
    }
    %c0 = arith.constant 0 : index
    %c0_1 = arith.constant 0 : index
    %3 = vector.load %arg2[%c0, %c0_1] : memref<16x128xf32, #tpu.memory_space<vmem>>, vector<16x128xf32>
    %c0_2 = arith.constant 0 : index
    %c0_3 = arith.constant 0 : index
    %4 = vector.load %arg3[%c0_2, %c0_3] : memref<16x128xf32, #tpu.memory_space<vmem>>, vector<16x128xf32>
    %5 = arith.subf %3, %4 : vector<16x128xf32>
    %6 = arith.mulf %5, %5 : vector<16x128xf32>
    %c0_4 = arith.constant 0 : index
    %c0_5 = arith.constant 0 : index
    %7 = vector.load %arg4[%c0_4, %c0_5] : memref<8x128xf32, #tpu.memory_space<vmem>>, vector<8x128xf32>
    %8 = vector.shape_cast %6 : vector<16x128xf32> to vector<2x8x128xf32>
    %cst = arith.constant dense<0.000000e+00> : vector<8x128xf32>
    %9 = vector.multi_reduction <add>, %8, %cst [0] : vector<2x8x128xf32> to vector<8x128xf32>
    %10 = arith.addf %7, %9 : vector<8x128xf32>
    %c0_6 = arith.constant 0 : index
    %c0_7 = arith.constant 0 : index
    %11 = vector.load %arg4[%c0_6, %c0_7] : memref<8x128xf32, #tpu.memory_space<vmem>>, vector<8x128xf32>
    tpu.vector_store %arg4[%c0_6, %c0_7], %10 {strides = array<i32>} : memref<8x128xf32, #tpu.memory_space<vmem>>, vector<8x128xf32>,
    return
  }
  func.func @transform_0(%arg0: i32, %arg1: i32) -> (i32, i32) {
    %c1_i32 = arith.constant 1 : i32
    %0 = arith.muli %arg0, %c1_i32 : i32
    %1 = arith.addi %0, %arg1 : i32
    %c0_i32 = arith.constant 0 : i32
    %2 = arith.minsi %1, %c0_i32 : i32
    %c0_i32_0 = arith.constant 0 : i32
    %c0_i32_1 = arith.constant 0 : i32
    return %2, %c0_i32_0 : i32, i32
  }
  func.func @transform_1(%arg0: i32, %arg1: i32) -> (i32, i32) {
    %c1_i32 = arith.constant 1 : i32
    %0 = arith.muli %arg0, %c1_i32 : i32
    %1 = arith.addi %0, %arg1 : i32
    %c0_i32 = arith.constant 0 : i32
    %2 = arith.minsi %1, %c0_i32 : i32
    %c0_i32_0 = arith.constant 0 : i32
    %c0_i32_1 = arith.constant 0 : i32
    return %2, %c0_i32_0 : i32, i32
  }
  func.func @transform_2(%arg0: i32, %arg1: i32) -> (i32, i32) {
    %c0_i32 = arith.constant 0 : i32
    %c0_i32_0 = arith.constant 0 : i32
    return %arg0, %c0_i32 : i32, i32
  }
}

</mosaic_0001>

<bundles_post_ra>
// kernel: vqvae_loss.1
= control target key start
LH: loop header
LB: loop body
LE: loop exit
PB: predicated region body
PF: predicated region fallthrough
CT: control target
= control target key end

     0   :  { %s139_s0 = inlined_call_operand.vmem [shape: f32[16,128], index: 0, kind: input, shape index: {}]   ;;  %s140_s1 = inlined_call_operand.vmem [shape: f32[16,128], index: 1, kind: input, shape index: {}]   ;;  %s141_s2 = inlined_call_operand.vmem [shape: f32[8,128], index: 2, kind: output, shape index: {}]  }
   0x1   :  { %v80_v0 = vld [vmem:[%s139_s0] sm:$0xff]  ;;  %v81_v1 = vld [vmem:[%s139_s0 + $0x8] sm:$0xff] }
   0x2   :  { %v82_v2 = vld [vmem:[%s140_s1] sm:$0xff]  ;;  %v83_v3 = vld [vmem:[%s140_s1 + $0x8] sm:$0xff] }
   0x3   :  { %v84_v4 = vsub.f32 %v80_v0, %v82_v2  ;;  %v85_v5 = vsub.f32 %v81_v1, %v83_v3 }
   0x5   :  { %v86_v6 = vmul.f32 %v84_v4, %v84_v4  ;;  %v87_v7 = vmul.f32 %v85_v5, %v85_v5 }
   0x7   :  { %v89_v8 = vadd.f32 %v87_v7, %v86_v6 }
   0x9   :  { %91 = vst [vmem:[%s141_s2] sm:$0xff] %v89_v8 }

</bundles_post_ra>
